<compile_context>
chip_gen: v7x
topology: tpu7x:2x2x1
jax: 0.10.0
libtpu: 0.0.40
codegen_flags: <defaults>
</compile_context>

<pallas_src>
import functools

import jax
import jax.numpy as jnp
from jax import lax
from jax.experimental import pallas as pl
from jax.experimental.pallas import tpu as pltpu


def _round_up(a, m):
    return (a + m - 1) // m * m


def _linear_layer_kernel(x_ref, w_ref, p_ref, o_ref, acc_ref,
                         *, batch_norm: bool, eps: float):
    k = pl.program_id(1)

    @pl.when(k == 0)
    def _():
        acc_ref[...] = jnp.zeros_like(acc_ref)

    # x tile: (B, tk); w tile: (tn, tk) in PyTorch layout -> contract the last
    # dims of both (i.e. x @ w.T) on the MXU with f32 accumulation.
    acc_ref[...] += lax.dot_general(
        x_ref[...], w_ref[...],
        dimension_numbers=(((1,), (1,)), ((), ())),
        preferred_element_type=jnp.float32)

    @pl.when(k == pl.num_programs(1) - 1)
    def _():
        p = p_ref[...]                          # (8, tn) f32 parameter slab
        y = acc_ref[...] + p[0]                 # bias (row 0), broadcast over batch
        y = jnp.maximum(y, 0.0)                 # ReLU
        if batch_norm:
            # BatchNorm1d, training-mode forward: per-feature batch mean and
            # biased variance over the (whole) batch axis, one-pass stats.
            inv_b = 1.0 / y.shape[0]
            mean = jnp.sum(y, axis=0, keepdims=True) * inv_b
            mean_sq = jnp.sum(y * y, axis=0, keepdims=True) * inv_b
            var = jnp.maximum(mean_sq - mean * mean, 0.0)
            y = (y - mean) * lax.rsqrt(var + eps)
            y = y * p[1] + p[2]                 # gamma (row 1), beta (row 2)
        o_ref[...] = y.astype(o_ref.dtype)


def linear_layer_forward(x, w, b, gamma=None, beta=None, *,
                         batch_norm=True, eps=1e-5):
    """Fused Linear -> ReLU -> optional BatchNorm1d (training-mode stats).

    x: (B, input_dim); w: (output_dim, input_dim) PyTorch layout;
    b/gamma/beta: (output_dim,).  Returns (B, output_dim) in x.dtype.
    """
    B, K = x.shape
    N = w.shape[0]
    dt = x.dtype
    elt = jnp.dtype(dt).itemsize

    # Tile sizes: 128 lanes for small dims, 256 for large (v6e/v7x MXU is
    # 2x256^2; v5e's 4x128^2 is fine with either).
    tk = 128 if K <= 128 else 256
    tn = 128 if N <= 128 else 256
    K_pad = _round_up(K, tk)
    N_pad = _round_up(N, tn)

    # Pad once in the wrapper (no-op when already aligned).  Padded K columns
    # are zero (no effect on the dot); padded N columns produce all-zero
    # features that are sliced off below and do not affect per-feature BN.
    x_p = x if K_pad == K else jnp.pad(x, ((0, 0), (0, K_pad - K)))
    w_p = jnp.asarray(w, dt)
    if w_p.shape != (N_pad, K_pad):
        w_p = jnp.pad(w_p, ((0, N_pad - N), (0, K_pad - K)))

    # Pack bias / gamma / beta into one sublane-aligned (8, N_pad) f32 slab:
    # row 0 = bias, row 1 = gamma, row 2 = beta, remaining rows zero.
    g = gamma if gamma is not None else jnp.ones((N,), jnp.float32)
    bt = beta if beta is not None else jnp.zeros((N,), jnp.float32)
    params = jnp.zeros((8, N_pad), jnp.float32)
    params = params.at[0, :N].set(jnp.asarray(b, jnp.float32).reshape(N))
    params = params.at[1, :N].set(jnp.asarray(g, jnp.float32).reshape(N))
    params = params.at[2, :N].set(jnp.asarray(bt, jnp.float32).reshape(N))

    grid = (N_pad // tn, K_pad // tk)

    # VMEM budget: double-buffered x/w/out tiles + f32 accumulator + params,
    # with headroom; capped at v7x's 64 MiB physical VMEM.
    need = (2 * (B * tk + tn * tk) * elt + 2 * B * tn * elt
            + B * tn * 4 + 2 * 8 * tn * 4)
    vmem_limit = int(min(max(4 * need, 16 * 1024 * 1024), 64 * 1024 * 1024))

    cost = pl.CostEstimate(
        flops=2 * B * K_pad * N_pad + 8 * B * N_pad,
        transcendentals=N_pad if batch_norm else 0,
        bytes_accessed=(x_p.size + w_p.size + B * N_pad) * elt + params.size * 4)

    kernel = functools.partial(_linear_layer_kernel,
                               batch_norm=batch_norm, eps=eps)

    out = pl.pallas_call(
        kernel,
        out_shape=jax.ShapeDtypeStruct((B, N_pad), dt),
        grid_spec=pltpu.PrefetchScalarGridSpec(
            num_scalar_prefetch=0,
            grid=grid,
            in_specs=[
                pl.BlockSpec((B, tk), lambda j, k: (0, k)),    # x (full batch)
                pl.BlockSpec((tn, tk), lambda j, k: (j, k)),   # w (PyTorch layout)
                pl.BlockSpec((8, tn), lambda j, k: (0, j)),    # bias/gamma/beta slab
            ],
            out_specs=pl.BlockSpec((B, tn), lambda j, k: (0, j)),
            scratch_shapes=[pltpu.VMEM((B, tn), jnp.float32)],
        ),
        compiler_params=pltpu.CompilerParams(
            dimension_semantics=("parallel", "arbitrary"),
            vmem_limit_bytes=vmem_limit),
        cost_estimate=cost,
    )(x_p, w_p, params)

    return out[:, :N] if N_pad != N else out


def _reference(x, w, b, gamma, beta, batch_norm=True, eps=1e-5):
    y = x @ w.T + b
    y = jnp.maximum(y, 0.0)
    if batch_norm:
        mean = jnp.mean(y, axis=0, keepdims=True)
        var = jnp.mean((y - mean) ** 2, axis=0, keepdims=True)
        y = (y - mean) / jnp.sqrt(var + eps)
        y = y * gamma + beta
    return y


if __name__ == "__main__":
    # Shapes implied by the module: 2D input (batch, input_dim).
    B, input_dim, output_dim = 8, 32, 16

    key = jax.random.PRNGKey(0)
    kx, kw, kb = jax.random.split(key, 3)

    x = jax.random.normal(kx, (B, input_dim), dtype=jnp.float32)

    # PyTorch-style parameter shapes / init.
    bound = 1.0 / jnp.sqrt(jnp.float32(input_dim))
    w = jax.random.uniform(kw, (output_dim, input_dim),
                           minval=-bound, maxval=bound, dtype=jnp.float32)
    b = jax.random.uniform(kb, (output_dim,),
                           minval=-bound, maxval=bound, dtype=jnp.float32)
    gamma = jnp.ones((output_dim,), jnp.float32)
    beta = jnp.zeros((output_dim,), jnp.float32)

    # With BatchNorm.
    out = linear_layer_forward(x, w, b, gamma, beta, batch_norm=True)
    out = jax.block_until_ready(out)
    ref = _reference(x, w, b, gamma, beta, batch_norm=True)
    assert out.shape == (B, output_dim)
    assert jnp.allclose(out, ref, atol=1e-4, rtol=1e-4), "mismatch (batch_norm=True)"

    # Without BatchNorm.
    out2 = linear_layer_forward(x, w, b, batch_norm=False)
    out2 = jax.block_until_ready(out2)
    ref2 = _reference(x, w, b, gamma, beta, batch_norm=False)
    assert out2.shape == (B, output_dim)
    assert jnp.allclose(out2, ref2, atol=1e-4, rtol=1e-4), "mismatch (batch_norm=False)"

    print("KERNEL_OK")
</pallas_src>

<mosaic_0001>
module attributes {stable_mosaic.version = 11 : i64} {
  func.func @_linear_layer_kernel(%arg0: i32, %arg1: i32, %arg2: memref<8x128xf32, #tpu.memory_space<vmem>>, %arg3: memref<128x128xf32, #tpu.memory_space<vmem>>, %arg4: memref<8x128xf32, #tpu.memory_space<vmem>>, %arg5: memref<8x128xf32, #tpu.memory_space<vmem>>, %arg6: memref<8x128xf32, #tpu.memory_space<vmem>>) attributes {dimension_semantics = [#tpu.dimension_semantics<parallel>, #tpu.dimension_semantics<arbitrary>], iteration_bounds = array<i64: 1, 1>, scalar_prefetch = 0 : i64, scratch_operands = 1 : i64, tpu.core_type = #tpu.core_type<tc>, window_params = [{transform_indices = @transform_0, window_bounds = array<i64: 8, 128>}, {transform_indices = @transform_1, window_bounds = array<i64: 128, 128>}, {transform_indices = @transform_2, window_bounds = array<i64: 8, 128>}, {transform_indices = @transform_3, window_bounds = array<i64: 8, 128>}]} {
    %c0_i32 = arith.constant 0 : i32
    %0 = arith.cmpi eq, %arg1, %c0_i32 : i32
    %1 = arith.extui %0 : i1 to i32
    %c0_i32_0 = arith.constant 0 : i32
    %2 = arith.cmpi ne, %1, %c0_i32_0 : i32
    scf.if %2 {
      %cst_10 = arith.constant 0.000000e+00 : f32
      %12 = vector.broadcast %cst_10 : f32 to vector<8x128xf32>
      %c0_11 = arith.constant 0 : index
      %c0_12 = arith.constant 0 : index
      %13 = vector.load %arg6[%c0_11, %c0_12] : memref<8x128xf32, #tpu.memory_space<vmem>>, vector<8x128xf32>
      tpu.vector_store %arg6[%c0_11, %c0_12], %12 {strides = array<i32>} : memref<8x128xf32, #tpu.memory_space<vmem>>, vector<8x128xf32>,
    } else {
    }
    %c0 = arith.constant 0 : index
    %c0_1 = arith.constant 0 : index
    %3 = vector.load %arg6[%c0, %c0_1] : memref<8x128xf32, #tpu.memory_space<vmem>>, vector<8x128xf32>
    %c0_2 = arith.constant 0 : index
    %c0_3 = arith.constant 0 : index
    %4 = vector.load %arg2[%c0_2, %c0_3] : memref<8x128xf32, #tpu.memory_space<vmem>>, vector<8x128xf32>
    %c0_4 = arith.constant 0 : index
    %c0_5 = arith.constant 0 : index
    %5 = vector.load %arg3[%c0_4, %c0_5] : memref<128x128xf32, #tpu.memory_space<vmem>>, vector<128x128xf32>
    %cst = arith.constant dense<0.000000e+00> : vector<8x128xf32>
    %6 = tpu.matmul %4, %5, %cst {dimension_numbers = #tpu.dot_dimension_numbers<[1], [1], [0], [0], [0, 0, 1, 0], [], []>} : vector<8x128xf32>, vector<128x128xf32>, vector<8x128xf32> -> vector<8x128xf32>
    %7 = arith.addf %3, %6 : vector<8x128xf32>
    %c0_6 = arith.constant 0 : index
    %c0_7 = arith.constant 0 : index
    %8 = vector.load %arg6[%c0_6, %c0_7] : memref<8x128xf32, #tpu.memory_space<vmem>>, vector<8x128xf32>
    tpu.vector_store %arg6[%c0_6, %c0_7], %7 {strides = array<i32>} : memref<8x128xf32, #tpu.memory_space<vmem>>, vector<8x128xf32>,
    %c0_i32_8 = arith.constant 0 : i32
    %9 = arith.cmpi eq, %arg1, %c0_i32_8 : i32
    %10 = arith.extui %9 : i1 to i32
    %c0_i32_9 = arith.constant 0 : i32
    %11 = arith.cmpi ne, %10, %c0_i32_9 : i32
    scf.if %11 {
      %c0_10 = arith.constant 0 : index
      %c0_11 = arith.constant 0 : index
      %12 = vector.load %arg4[%c0_10, %c0_11] : memref<8x128xf32, #tpu.memory_space<vmem>>, vector<8x128xf32>
      %c0_12 = arith.constant 0 : index
      %c0_13 = arith.constant 0 : index
      %13 = vector.load %arg6[%c0_12, %c0_13] : memref<8x128xf32, #tpu.memory_space<vmem>>, vector<8x128xf32>
      %14 = vector.extract_strided_slice %12 {offsets = [0, 0], sizes = [1, 128], strides = [1, 1]} : vector<8x128xf32> to vector<1x128xf32>
      %15 = vector.shape_cast %14 : vector<1x128xf32> to vector<128xf32>
      %16 = vector.shape_cast %15 : vector<128xf32> to vector<1x128xf32>
      %17 = vector.broadcast %16 : vector<1x128xf32> to vector<8x128xf32>
      %18 = arith.addf %13, %17 : vector<8x128xf32>
      %cst_14 = arith.constant 0.000000e+00 : f32
      %19 = vector.broadcast %cst_14 : f32 to vector<8x128xf32>
      %20 = arith.maximumf %18, %19 : vector<8x128xf32>
      %cst_15 = arith.constant dense<0.000000e+00> : vector<128xf32>
      %21 = vector.multi_reduction <add>, %20, %cst_15 [0] : vector<8x128xf32> to vector<128xf32>
      %22 = vector.shape_cast %21 : vector<128xf32> to vector<1x128xf32>
      %cst_16 = arith.constant 1.250000e-01 : f32
      %23 = vector.broadcast %cst_16 : f32 to vector<1x128xf32>
      %24 = arith.mulf %22, %23 : vector<1x128xf32>
      %25 = arith.mulf %20, %20 : vector<8x128xf32>
      %cst_17 = arith.constant dense<0.000000e+00> : vector<128xf32>
      %26 = vector.multi_reduction <add>, %25, %cst_17 [0] : vector<8x128xf32> to vector<128xf32>
      %27 = vector.shape_cast %26 : vector<128xf32> to vector<1x128xf32>
      %cst_18 = arith.constant 1.250000e-01 : f32
      %28 = vector.broadcast %cst_18 : f32 to vector<1x128xf32>
      %29 = arith.mulf %27, %28 : vector<1x128xf32>
      %30 = arith.mulf %24, %24 : vector<1x128xf32>
      %31 = arith.subf %29, %30 : vector<1x128xf32>
      %cst_19 = arith.constant 0.000000e+00 : f32
      %32 = vector.broadcast %cst_19 : f32 to vector<1x128xf32>
      %33 = arith.maximumf %31, %32 : vector<1x128xf32>
      %34 = vector.broadcast %24 : vector<1x128xf32> to vector<8x128xf32>
      %35 = arith.subf %20, %34 : vector<8x128xf32>
      %cst_20 = arith.constant 9.99999974E-6 : f32
      %36 = vector.broadcast %cst_20 : f32 to vector<1x128xf32>
      %37 = arith.addf %33, %36 : vector<1x128xf32>
      %38 = math.rsqrt %37 : vector<1x128xf32>
      %39 = vector.broadcast %38 : vector<1x128xf32> to vector<8x128xf32>
      %40 = arith.mulf %35, %39 : vector<8x128xf32>
      %41 = vector.extract_strided_slice %12 {offsets = [1, 0], sizes = [1, 128], strides = [1, 1]} : vector<8x128xf32> to vector<1x128xf32>
      %42 = vector.shape_cast %41 : vector<1x128xf32> to vector<128xf32>
      %43 = vector.shape_cast %42 : vector<128xf32> to vector<1x128xf32>
      %44 = vector.broadcast %43 : vector<1x128xf32> to vector<8x128xf32>
      %45 = arith.mulf %40, %44 : vector<8x128xf32>
      %46 = vector.extract_strided_slice %12 {offsets = [2, 0], sizes = [1, 128], strides = [1, 1]} : vector<8x128xf32> to vector<1x128xf32>
      %47 = vector.shape_cast %46 : vector<1x128xf32> to vector<128xf32>
      %48 = vector.shape_cast %47 : vector<128xf32> to vector<1x128xf32>
      %49 = vector.broadcast %48 : vector<1x128xf32> to vector<8x128xf32>
      %50 = arith.addf %45, %49 : vector<8x128xf32>
      %c0_21 = arith.constant 0 : index
      %c0_22 = arith.constant 0 : index
      %51 = vector.load %arg5[%c0_21, %c0_22] : memref<8x128xf32, #tpu.memory_space<vmem>>, vector<8x128xf32>
      tpu.vector_store %arg5[%c0_21, %c0_22], %50 {strides = array<i32>} : memref<8x128xf32, #tpu.memory_space<vmem>>, vector<8x128xf32>,
    } else {
    }
    return
  }
  func.func @transform_0(%arg0: i32, %arg1: i32) -> (i32, i32) {
    %c0_i32 = arith.constant 0 : i32
    %c0_i32_0 = arith.constant 0 : i32
    return %c0_i32, %arg1 : i32, i32
  }
  func.func @transform_1(%arg0: i32, %arg1: i32) -> (i32, i32) {
    %c0_i32 = arith.constant 0 : i32
    return %arg0, %arg1 : i32, i32
  }
  func.func @transform_2(%arg0: i32, %arg1: i32) -> (i32, i32) {
    %c0_i32 = arith.constant 0 : i32
    %c0_i32_0 = arith.constant 0 : i32
    return %c0_i32, %arg0 : i32, i32
  }
  func.func @transform_3(%arg0: i32, %arg1: i32) -> (i32, i32) {
    %c0_i32 = arith.constant 0 : i32
    %c0_i32_0 = arith.constant 0 : i32
    return %c0_i32, %arg0 : i32, i32
  }
}

</mosaic_0001>

<bundles_post_ra>
// kernel: tpu_custom_call.1
= control target key start
LH: loop header
LB: loop body
LE: loop exit
PB: predicated region body
PF: predicated region fallthrough
CT: control target
= control target key end

     0   :  { %8 = vsyncpa [#allocation4], 0  ;;  %s465_s0 = inlined_call_operand.hbm [shape: f32[8,128], index: 0, kind: input, shape index: {}]   ;;  %s466_s1 = inlined_call_operand.hbm [shape: f32[128,128], index: 1, kind: input, shape index: {}]   ;;  %s467_s2 = inlined_call_operand.hbm [shape: f32[8,128], index: 2, kind: input, shape index: {}]   ;;  %s468_s3 = inlined_call_operand.hbm [shape: f32[8,128], index: 3, kind: output, shape index: {}]  }
   0x1   :  { %9 = vsyncpa [#allocation7], 0 }
   0x2   :  { %10 = vsyncpa [#allocation5], 0  ;;  %s388_s12 = smov [#allocation6]   ;;  %s294_s16 = scalar_lea.hbm %s466_s1, 2048 }
   0x3   :  { %s26_s13 = sshll.u32 %s388_s12, 4  ;;  %p295_p0 = scmp.ne.s32.totalorder %s466_s1, %s294_s16  ;;  %s27_s13 = int_to_ptr.vmem [resolvable:$true] %s26_s13 }
   0x4   :  { %p298_p1 = scmp.lt.u32.totalorder %s294_s16, %s466_s1 }
   0x6   :  { %p300_p2 = pnand %p298_p1, %p295_p0 }
   0x8   :  { %303 = shalt.err (!%p300_p2)
}
   0x9   :  { %s304_s21 = scalar_lea.vmem %s27_s13, 2048  ;;  %p309_p4 = scmp.lt.s32.totalorder %s27_s13, %s27_s13 }
   0xa   :  { %p305_p3 = scmp.ne.s32.totalorder %s27_s13, %s304_s21  ;;  %p310_p5 = scmp.lt.s32.totalorder %s304_s21, %s304_s21 }
   0xc   :  { %p311_p6 = por %p310_p5, %p309_p4 }
   0xe   :  { %p312_p7 = pnand %p311_p6, %p305_p3 }
  0x10   :  { %315 = shalt.err (!%p312_p7)
}
  0x11   :  { %s389_s22 = smov 128   ;;  %s390_s23 = smov 8  }
  0x12   :  { %32 = dma.hbm_to_vmem [thread:$0]  %s466_s1, 2048, %s27_s13, [#allocation7], %s389_s22, %s389_s22, %s390_s23  }
  0x13   :  { %s391_s26 = smov [#allocation3]   ;;  %s392_s28 = smov [#allocation8]  }
  0x14   :  { %s17_s27 = sshll.u32 %s391_s26, 4  ;;  %s39_s29 = sshll.u32 %s392_s28, 4  ;;  %s18_s27 = int_to_ptr.vmem [resolvable:$true] %s17_s27  ;;  %s40_s29 = int_to_ptr.vmem [resolvable:$true] %s39_s29 }
  0x15   :  { %s316_s5 = scalar_lea.hbm %s465_s0, 128 }
  0x16   :  { %p317_p8 = scmp.ne.s32.totalorder %s465_s0, %s316_s5  ;;  %p320_p9 = scmp.lt.u32.totalorder %s316_s5, %s465_s0 }
  0x18   :  { %p322_p10 = pnand %p320_p9, %p317_p8 }
  0x1a   :  { %325 = shalt.err (!%p322_p10)
}
  0x1b   :  { %s326_s1 = scalar_lea.vmem %s18_s27, 128  ;;  %p331_p12 = scmp.lt.s32.totalorder %s18_s27, %s18_s27 }
  0x1c   :  { %p327_p11 = scmp.ne.s32.totalorder %s18_s27, %s326_s1  ;;  %p332_p13 = scmp.lt.s32.totalorder %s326_s1, %s326_s1 }
  0x1e   :  { %p333_p0 = por %p332_p13, %p331_p12 }
  0x20   :  { %p334_p1 = pnand %p333_p0, %p327_p11 }
  0x22   :  { %337 = shalt.err (!%p334_p1)
}
  0x23   :  { %20 = dma.hbm_to_vmem [thread:$0]  %s465_s0, 128, %s18_s27, [#allocation4]  }
  0x24   :  { %s338_s14 = scalar_lea.hbm %s467_s2, 128 }
  0x25   :  { %p339_p2 = scmp.ne.s32.totalorder %s467_s2, %s338_s14  ;;  %p342_p3 = scmp.lt.u32.totalorder %s338_s14, %s467_s2 }
  0x27   :  { %p344_p4 = pnand %p342_p3, %p339_p2 }
  0x29   :  { %347 = shalt.err (!%p344_p4)
}
  0x2a   :  { %s348_s19 = scalar_lea.vmem %s40_s29, 128  ;;  %p353_p6 = scmp.lt.s32.totalorder %s40_s29, %s40_s29 }
  0x2b   :  { %p349_p5 = scmp.ne.s32.totalorder %s40_s29, %s348_s19  ;;  %p354_p7 = scmp.lt.s32.totalorder %s348_s19, %s348_s19 }
  0x2d   :  { %p355_p8 = por %p354_p7, %p353_p6 }
  0x2f   :  { %p356_p9 = pnand %p355_p8, %p349_p5 }
  0x31   :  { %359 = shalt.err (!%p356_p9)
}
  0x32   :  { %42 = dma.hbm_to_vmem [thread:$0]  %s467_s2, 128, %s40_s29, [#allocation7]  }
  0x33   :  { %382 = dma.done.wait [#allocation4], 128  }
  0x34   :  { %383 = vsyncadd [#allocation4], 4294967168 }
  0x35   :  { %384 = dma.done.wait [#allocation7], 2176  }
  0x36   :  { %385 = vsyncadd [#allocation7], 4294965120  ;;  %v393_v0 = vmov 0.0|0.0   ;;  %vm394_vm0 = vmmov 0   ;;  %v395_v1 = vmov 0.0   ;;  %v59_v2 = vld [vmem:[#allocation6] sm:$0xff]  ;;  %v152_v27 = vlaneseq }
  0x37   :  { %259 = vmatprep.subr.bf16.mxu0 %v393_v0  ;;  %256 = vmatprep.mubr.msk.f32.mxu0 %vm394_vm0, %v395_v1  ;;  %v60_v3 = vld [vmem:[#allocation6 + $0x8] sm:$0xff]  ;;  %v61_v5 = vld [vmem:[#allocation6 + $0x10] sm:$0xff]  ;;  %v62_v6 = vld [vmem:[#allocation6 + $0x18] sm:$0xff]  ;;  %s396_s2 = smov [#allocation9]  }
  0x38   :  { %v260_v4 = vpack.c.bf16 %v60_v3, %v59_v2  ;;  %v263_v7 = vpack.c.bf16 %v62_v6, %v61_v5  ;;  %v63_v8 = vld [vmem:[#allocation6 + $0x20] sm:$0xff]  ;;  %v64_v9 = vld [vmem:[#allocation6 + $0x28] sm:$0xff]  ;;  %v65_v11 = vld [vmem:[#allocation6 + $0x30] sm:$0xff]  ;;  %v153_v28 = vshrl.u32 %v152_v27, 7  ;;  %s197_s21 = sshll.u32 %s396_s2, 4  ;;  %s198_s21 = int_to_ptr.vmem [resolvable:$true] %s197_s21 }
  0x39   :  { %v266_v10 = vpack.c.bf16 %v64_v9, %v63_v8  ;;  %v66_v12 = vld [vmem:[#allocation6 + $0x38] sm:$0xff]  ;;  %v67_v14 = vld [vmem:[#allocation6 + $0x40] sm:$0xff]  ;;  %v68_v15 = vld [vmem:[#allocation6 + $0x48] sm:$0xff]  ;;  %s360_s22 = scalar_lea.vmem %s198_s21, 128  ;;  %p365_p11 = scmp.lt.s32.totalorder %s198_s21, %s198_s21 }
  0x3a   :  { %261 = vmatpush3.bf16.xpose.msra.mxu0 %v260_v4  ;;  %v269_v13 = vpack.c.bf16 %v66_v12, %v65_v11  ;;  %v272_v16 = vpack.c.bf16 %v68_v15, %v67_v14  ;;  %v69_v17 = vld [vmem:[#allocation6 + $0x50] sm:$0xff]  ;;  %v70_v18 = vld [vmem:[#allocation6 + $0x58] sm:$0xff]  ;;  %v71_v20 = vld [vmem:[#allocation6 + $0x60] sm:$0xff]  ;;  %v154_v29 = vsub.s32 0, %v153_v28  ;;  %v182_v55 = vsub.s32 1, %v153_v28  ;;  %p361_p10 = scmp.ne.s32.totalorder %s198_s21, %s360_s22  ;;  %p366_p12 = scmp.lt.s32.totalorder %s360_s22, %s360_s22 }
  0x3b   :  { %262 = vmatprep.subr.bf16.mxu0 %v393_v0  ;;  %v275_v19 = vpack.c.bf16 %v70_v18, %v69_v17  ;;  %v72_v21 = vld [vmem:[#allocation6 + $0x68] sm:$0xff]  ;;  %v73_v23 = vld [vmem:[#allocation6 + $0x70] sm:$0xff]  ;;  %v74_v24 = vld [vmem:[#allocation6 + $0x78] sm:$0xff]  ;;  %v187_v56 = vsub.s32 2, %v153_v28 }
  0x3c   :  { %v278_v22 = vpack.c.bf16 %v72_v21, %v71_v20  ;;  %v281_v25 = vpack.c.bf16 %v74_v24, %v73_v23  ;;  %v58_v26 = vld [vmem:[#allocation3] sm:$0xff]  ;;  %v150_v30 = vld [vmem:[#allocation8] sm:$0xff]  ;;  %p367_p13 = por %p366_p12, %p365_p11 }
  0x3d   :  { %v155_v31 = vrot.slane %v150_v30, %v154_v29  ;;  %v183_v58 = vrot.slane %v150_v30, %v182_v55  ;;  %v188_v61 = vrot.slane %v150_v30, %v187_v56 }
  0x3e   :  { %p368_p0 = pnand %p367_p13, %p361_p10 }
  0x42   :  { %264 = vmatpush3.bf16.xpose.msra.mxu0 %v263_v7 }
  0x43   :  { %265 = vmatprep.subr.bf16.mxu0 %v393_v0 }
  0x4a   :  { %267 = vmatpush3.bf16.xpose.msra.mxu0 %v266_v10 }
  0x4b   :  { %268 = vmatprep.subr.bf16.mxu0 %v393_v0 }
  0x52   :  { %270 = vmatpush3.bf16.xpose.msra.mxu0 %v269_v13 }
  0x53   :  { %271 = vmatprep.subr.bf16.mxu0 %v393_v0 }
  0x5a   :  { %273 = vmatpush3.bf16.xpose.msra.mxu0 %v272_v16 }
  0x5b   :  { %274 = vmatprep.subr.bf16.mxu0 %v393_v0 }
  0x62   :  { %276 = vmatpush3.bf16.xpose.msra.mxu0 %v275_v19 }
  0x63   :  { %277 = vmatprep.subr.bf16.mxu0 %v393_v0 }
  0x6a   :  { %279 = vmatpush3.bf16.xpose.msra.mxu0 %v278_v22 }
  0x6b   :  { %280 = vmatprep.subr.bf16.mxu0 %v393_v0 }
  0x72   :  { %282 = vmatpush3.bf16.xpose.msra.mxu0 %v281_v25 }
  0x79   :  { %257 = vmatmul.mubr.f32.vlgmr.msra.gmra.mrb[0].mxu0 %v58_v26 }
 0x14c   :  { %v141_v32 = vpop.f32.mrb[0].mxu0 }
 0x14d   :  { %v156_v33 = vadd.f32 %v155_v31, %v141_v32  ;;  %v258_v34 = vpop.f32.mrb[1].mxu0 }
 0x14f   :  { %v157_v35 = vmax.f32 %v156_v33, 0.0 }
 0x151   :  { %v158_v36 = vrot.slane %v157_v35, 4  ;;  %v165_v37 = vmul.f32 %v157_v35, %v157_v35 }
 0x153   :  { %v159_v38 = vadd.f32 %v158_v36, %v157_v35  ;;  %v166_v39 = vrot.slane %v165_v37, 4 }
 0x155   :  { %v160_v40 = vrot.slane %v159_v38, 2  ;;  %v167_v41 = vadd.f32 %v166_v39, %v165_v37 }
 0x157   :  { %v161_v42 = vadd.f32 %v160_v40, %v159_v38  ;;  %v168_v43 = vrot.slane %v167_v41, 2 }
 0x159   :  { %v162_v44 = vrot.slane %v161_v42, 1  ;;  %v169_v45 = vadd.f32 %v168_v43, %v167_v41 }
 0x15b   :  { %v163_v46 = vadd.f32 %v162_v44, %v161_v42  ;;  %v170_v47 = vrot.slane %v169_v45, 1 }
 0x15d   :  { %v164_v48 = vmul.f32 0.125, %v163_v46  ;;  %v171_v49 = vadd.f32 %v170_v47, %v169_v45 }
 0x15f   :  { %v172_v50 = vmul.f32 0.125, %v171_v49  ;;  %v173_v51 = vmul.f32 %v164_v48, %v164_v48  ;;  %v176_v57 = vsub.f32 %v157_v35, %v164_v48 }
 0x161   :  { %v174_v52 = vsub.f32 %v172_v50, %v173_v51 }
 0x163   :  { %v175_v53 = vmax.f32 %v174_v52, 0.0 }
 0x165   :  { %v177_v54 = vadd.f32 1e-05, %v175_v53 }
 0x167   :  { %292 = vrsqrt.f32 %v177_v54 }
 0x171   :  { %v293_v59 = vpop.eup %292 }
 0x172   :  { %v179_v60 = vmul.f32 %v293_v59, %v176_v57 }
 0x174   :  { %v184_v62 = vmul.f32 %v183_v58, %v179_v60 }
 0x176   :  { %v189_v63 = vadd.f32 %v188_v61, %v184_v62 }
 0x178   :  { %190 = vst [vmem:[#allocation9] sm:$0xff] %v189_v63 }
 0x179   :  { %371 = shalt.err (!%p368_p0)
}
 0x17a   :  { %s372_s25 = scalar_lea.hbm %s468_s3, 128 }
 0x17b   :  { %p373_p1 = scmp.ne.s32.totalorder %s468_s3, %s372_s25  ;;  %p376_p2 = scmp.lt.u32.totalorder %s372_s25, %s468_s3 }
 0x17d   :  { %p378_p3 = pnand %p376_p2, %p373_p1 }
 0x17f   :  { %381 = shalt.err (!%p378_p3)
}
 0x180   :  { %200 = dma.vmem_to_hbm [thread:$0]  %s198_s21, 128, %s468_s3, [#allocation5]  }
 0x181   :  { %386 = dma.done.wait [#allocation5], 128  }
 0x182   :  { %387 = vsyncadd [#allocation5], 4294967168 }
 0x183   :  { %204 = vsyncpa [#allocation4], 1 }
 0x184   :  { %205 = vsyncpa [#allocation7], 1 }
 0x185   :  { %206 = vsyncpa [#allocation5], 1 }

</bundles_post_ra>
